<compile_context>
chip_gen: v7x
topology: tpu7x:2x2x1
jax: 0.10.0
libtpu: 0.0.40
codegen_flags: <defaults>
</compile_context>

<pallas_src>
import numpy as np
import jax
import jax.numpy as jnp
from jax.experimental import pallas as pl
from jax.experimental.pallas import tpu as pltpu


_LANES = 128
_DEFAULT_TOKENS_PER_TILE = 8192
# Peak per-step VMEM at 8192 tokens is ~20 MiB (lane-padded bf16 inputs, f32
# intermediates, concat scratch); 48 MiB leaves headroom on v5e/v6e (128 MiB
# physical) and stays under v7x's 64 MiB/TC.
_VMEM_LIMIT_BYTES = 48 * 1024 * 1024


def _ceil_to(n, m):
    return -(-n // m) * m


def _plan_tokens(n, requested):
    """Choose (tile, n_pad, steps) for the token axis.

    tile is a multiple of 128, capped at the workload; when the workload spans
    more than one lane-row we keep >= 2 grid steps (v7x megacore) and rebalance
    so the last tile is not mostly padding.
    """
    n_rows = _ceil_to(max(n, 1), _LANES) // _LANES
    req_rows = max(1, min(requested, n_rows * _LANES) // _LANES)
    if n_rows > 1:
        req_rows = min(req_rows, -(-n_rows // 2))   # at least 2 steps
    steps = -(-n_rows // req_rows)
    tile_rows = -(-n_rows // steps)                 # rebalance tile size
    tile = tile_rows * _LANES
    return tile, steps * tile, steps


# ----------------------------- Pallas kernels ------------------------------ #

def _dot_predict_kernel(ks_ref, q_ref, o_ref):
    # Blocks: [R_TILE, 128, D] bf16 — tokens on (rows x sublanes), features on
    # lanes.  Upcast before the multiply so product + accumulation are f32
    # (v5e's VPU has no bf16; on v6e/v7x this branch is HBM/DMA-bound anyway).
    ks = ks_ref[...].astype(jnp.float32)
    q = q_ref[...].astype(jnp.float32)
    s = jnp.sum(ks * q, axis=-1)                    # [R_TILE, 128] lane-dense
    o_ref[...] = jax.nn.sigmoid(s)


def _mlp_predict_kernel(ks_ref, q_ref, w1_ref, b1_ref, w2_ref, b2_ref,
                        o_ref, xcat_ref):
    # Stage cat(ks, q) into VMEM scratch with two lane-offset stores so h2y is
    # a single K = ks_dim + emb_dim matmul (one MXU push stream instead of two
    # K=32 slivers); bf16 operands, f32 accumulation.
    dk = ks_ref.shape[1]
    xcat_ref[:, :dk] = ks_ref[...]
    xcat_ref[:, dk:] = q_ref[...]

    y = jnp.dot(xcat_ref[...], w1_ref[...], preferred_element_type=jnp.float32)
    y = jnp.maximum(y + b1_ref[...], 0.0)           # [TILE_N, E] f32

    # y2o (out_features == 1): VPU multiply + XLU cross-lane reduce.  The
    # reshape only splits the leading (sublane-major) token axis by a multiple
    # of the (8,128) tile -> layout-preserving view; the token->lane placement
    # is fused into the reduce so the output stays lane-dense [R_TILE, 128]
    # and the writeback DMA is a dense 128-lane transfer.
    prod = y * w2_ref[...]                          # [TILE_N, E]
    tile_n, e = prod.shape
    z = jnp.sum(prod.reshape(tile_n // _LANES, _LANES, e), axis=-1)
    o_ref[...] = jax.nn.sigmoid(z + b2_ref[0, 0])   # [R_TILE, 128]


# ------------------------------ Host wrappers ------------------------------ #

def predict_dot(ks_emb, q_emb, *, tokens_per_tile=_DEFAULT_TOKENS_PER_TILE):
    """sigmoid(sum(ks_emb * q_emb, -1)); returns [B, S]."""
    B, S, D = ks_emb.shape
    N = B * S
    tile, n_pad, steps = _plan_tokens(N, tokens_per_tile)
    r_tile = tile // _LANES

    # bf16 activations halve HBM bytes; in a fused pipeline the producer would
    # already emit bf16 (the cast/pad here is wrapper glue).
    ks2 = ks_emb.reshape(N, D).astype(jnp.bfloat16)
    q2 = q_emb.reshape(N, D).astype(jnp.bfloat16)
    if n_pad != N:
        ks2 = jnp.pad(ks2, ((0, n_pad - N), (0, 0)))
        q2 = jnp.pad(q2, ((0, n_pad - N), (0, 0)))
    r_total = n_pad // _LANES
    ks3 = ks2.reshape(r_total, _LANES, D)           # contiguous -> free reshape
    q3 = q2.reshape(r_total, _LANES, D)

    out = pl.pallas_call(
        _dot_predict_kernel,
        out_shape=jax.ShapeDtypeStruct((r_total, _LANES), jnp.float32),
        grid=(steps,),
        in_specs=[
            pl.BlockSpec((r_tile, _LANES, D), lambda i: (i, 0, 0)),
            pl.BlockSpec((r_tile, _LANES, D), lambda i: (i, 0, 0)),
        ],
        out_specs=pl.BlockSpec((r_tile, _LANES), lambda i: (i, 0)),
        compiler_params=pltpu.CompilerParams(
            dimension_semantics=("parallel",),
            vmem_limit_bytes=_VMEM_LIMIT_BYTES),
    )(ks3, q3)
    return out.reshape(-1)[:N].reshape(B, S)


def predict_mlp(ks_emb, q_emb, w1, b1, w2, b2, *,
                tokens_per_tile=_DEFAULT_TOKENS_PER_TILE):
    """sigmoid(y2o(relu(h2y(cat(ks, q))))).squeeze(-1); returns [B, S].

    Parameters use PyTorch nn.Linear layouts:
      w1: [exercise_dim, ks_dim + emb_dim]  (h2y.weight)
      b1: [exercise_dim]                    (h2y.bias)
      w2: [1, exercise_dim]                 (y2o.weight)
      b2: [1]                               (y2o.bias)
    """
    B, S, Dk = ks_emb.shape
    De = q_emb.shape[-1]
    Din = Dk + De
    E = w1.shape[0]
    N = B * S
    tile, n_pad, steps = _plan_tokens(N, tokens_per_tile)
    r_tile = tile // _LANES

    ks2 = ks_emb.reshape(N, Dk).astype(jnp.bfloat16)
    q2 = q_emb.reshape(N, De).astype(jnp.bfloat16)
    if n_pad != N:
        ks2 = jnp.pad(ks2, ((0, n_pad - N), (0, 0)))
        q2 = jnp.pad(q2, ((0, n_pad - N), (0, 0)))

    # Stack / pre-transpose the (tiny, resident) weight once on the host so the
    # kernel runs a single K=Din matmul and never sees a host-side activation
    # concat (the concat is staged in VMEM inside the kernel).
    w1cat = jnp.asarray(w1).T.astype(jnp.bfloat16)             # [Din, E]
    b1r = jnp.asarray(b1).reshape(1, E).astype(jnp.float32)
    w2r = jnp.asarray(w2).reshape(1, E).astype(jnp.float32)
    b2s = jnp.asarray(b2).reshape(1, 1).astype(jnp.float32)    # scalar -> SMEM

    out = pl.pallas_call(
        _mlp_predict_kernel,
        out_shape=jax.ShapeDtypeStruct((n_pad // _LANES, _LANES), jnp.float32),
        grid=(steps,),
        in_specs=[
            pl.BlockSpec((tile, Dk), lambda i: (i, 0)),
            pl.BlockSpec((tile, De), lambda i: (i, 0)),
            pl.BlockSpec((Din, E), lambda i: (0, 0)),   # resident weights
            pl.BlockSpec((1, E), lambda i: (0, 0)),
            pl.BlockSpec((1, E), lambda i: (0, 0)),
            pl.BlockSpec(memory_space=pltpu.MemorySpace.SMEM),
        ],
        out_specs=pl.BlockSpec((r_tile, _LANES), lambda i: (i, 0)),
        scratch_shapes=[pltpu.VMEM((tile, Din), jnp.bfloat16)],
        compiler_params=pltpu.CompilerParams(
            dimension_semantics=("parallel",),
            vmem_limit_bytes=_VMEM_LIMIT_BYTES),
    )(ks2, q2, w1cat, b1r, w2r, b2s)
    return out.reshape(-1)[:N].reshape(B, S)


# --------------------------------- Driver ---------------------------------- #

if __name__ == "__main__":
    B, S = 2, 8
    ks_dim, emb_dim, exercise_dim = 32, 32, 64
    Din = ks_dim + emb_dim

    key = jax.random.PRNGKey(0)
    k_ks, k_q, k_w1, k_b1, k_w2, k_b2 = jax.random.split(key, 6)

    ks_emb = jax.random.normal(k_ks, (B, S, ks_dim), dtype=jnp.float32)
    q_emb = jax.random.normal(k_q, (B, S, emb_dim), dtype=jnp.float32)

    # PyTorch-layout synthetic parameters (h2y, y2o).
    w1 = jax.random.normal(k_w1, (exercise_dim, Din), dtype=jnp.float32) * 0.05
    b1 = jax.random.normal(k_b1, (exercise_dim,), dtype=jnp.float32) * 0.05
    w2 = jax.random.normal(k_w2, (1, exercise_dim), dtype=jnp.float32) * 0.05
    b2 = jax.random.normal(k_b2, (1,), dtype=jnp.float32) * 0.05

    # bf16-rounded copies of the activations (what the kernels consume).
    ks_bf = ks_emb.astype(jnp.bfloat16)
    q_bf = q_emb.astype(jnp.bfloat16)

    # --- 'dot' branch ---
    p_dot = jax.block_until_ready(predict_dot(ks_emb, q_emb))
    ref_dot_f32 = jax.nn.sigmoid(jnp.sum(ks_emb * q_emb, axis=-1))
    ref_dot_match = jax.nn.sigmoid(
        jnp.sum(ks_bf.astype(jnp.float32) * q_bf.astype(jnp.float32), axis=-1))
    assert p_dot.shape == (B, S)
    assert np.allclose(np.asarray(p_dot), np.asarray(ref_dot_match), atol=1e-4)
    assert np.allclose(np.asarray(p_dot), np.asarray(ref_dot_f32), atol=2.5e-2)

    # --- default (MLP) branch ---
    p_mlp = jax.block_until_ready(predict_mlp(ks_emb, q_emb, w1, b1, w2, b2))
    # Pure f32 reference, PyTorch semantics (eval-mode dropout = identity).
    x_ref = jnp.concatenate([ks_emb, q_emb], axis=-1)
    y_ref = jnp.maximum(jnp.einsum("bsd,ed->bse", x_ref, w1) + b1, 0.0)
    ref_mlp_f32 = jax.nn.sigmoid(jnp.einsum("bse,oe->bso", y_ref, w2) + b2)[..., 0]
    # Matched reference (same bf16 rounding / single K=64 f32-accum matmul as
    # the kernel).
    x_bf = jnp.concatenate([ks_bf, q_bf], axis=-1)
    w1cat_bf = w1.T.astype(jnp.bfloat16)
    y_m = jnp.einsum("bsd,de->bse", x_bf, w1cat_bf,
                     preferred_element_type=jnp.float32)
    y_m = jnp.maximum(y_m + b1[None, None, :], 0.0)
    z_m = jnp.sum(y_m * w2.reshape(1, 1, -1), axis=-1) + b2[0]
    ref_mlp_match = jax.nn.sigmoid(z_m)
    assert p_mlp.shape == (B, S)
    assert np.allclose(np.asarray(p_mlp), np.asarray(ref_mlp_match), atol=1e-4)
    assert np.allclose(np.asarray(p_mlp), np.asarray(ref_mlp_f32), atol=2.5e-2)

    print("KERNEL_OK")
</pallas_src>

<mosaic_0001>
module attributes {stable_mosaic.version = 11 : i64} {
  func.func @_dot_predict_kernel(%arg0: i32, %arg1: memref<1x128x32xbf16, #tpu.memory_space<vmem>>, %arg2: memref<1x128x32xbf16, #tpu.memory_space<vmem>>, %arg3: memref<1x128xf32, #tpu.memory_space<vmem>>) attributes {dimension_semantics = [#tpu.dimension_semantics<parallel>], iteration_bounds = array<i64: 1>, scalar_prefetch = 0 : i64, scratch_operands = 0 : i64, tpu.core_type = #tpu.core_type<tc>, window_params = [{transform_indices = @transform_0, window_bounds = array<i64: 1, 128, 32>}, {transform_indices = @transform_1, window_bounds = array<i64: 1, 128, 32>}, {transform_indices = @transform_2, window_bounds = array<i64: 1, 128>}]} {
    %c0 = arith.constant 0 : index
    %c0_0 = arith.constant 0 : index
    %c0_1 = arith.constant 0 : index
    %0 = vector.load %arg1[%c0, %c0_0, %c0_1] : memref<1x128x32xbf16, #tpu.memory_space<vmem>>, vector<1x128x32xbf16>
    %1 = arith.extf %0 : vector<1x128x32xbf16> to vector<1x128x32xf32>
    %c0_2 = arith.constant 0 : index
    %c0_3 = arith.constant 0 : index
    %c0_4 = arith.constant 0 : index
    %2 = vector.load %arg2[%c0_2, %c0_3, %c0_4] : memref<1x128x32xbf16, #tpu.memory_space<vmem>>, vector<1x128x32xbf16>
    %3 = arith.extf %2 : vector<1x128x32xbf16> to vector<1x128x32xf32>
    %4 = arith.mulf %1, %3 : vector<1x128x32xf32>
    %cst = arith.constant dense<0.000000e+00> : vector<1x128xf32>
    %5 = vector.multi_reduction <add>, %4, %cst [2] : vector<1x128x32xf32> to vector<1x128xf32>
    %6 = arith.negf %5 : vector<1x128xf32>
    %7 = math.exp %6 : vector<1x128xf32>
    %cst_5 = arith.constant 1.000000e+00 : f32
    %8 = vector.broadcast %cst_5 : f32 to vector<1x128xf32>
    %9 = arith.addf %8, %7 : vector<1x128xf32>
    %10 = arith.divf %8, %9 : vector<1x128xf32>
    %c0_6 = arith.constant 0 : index
    %c0_7 = arith.constant 0 : index
    %11 = vector.load %arg3[%c0_6, %c0_7] : memref<1x128xf32, #tpu.memory_space<vmem>>, vector<1x128xf32>
    tpu.vector_store %arg3[%c0_6, %c0_7], %10 {strides = array<i32>} : memref<1x128xf32, #tpu.memory_space<vmem>>, vector<1x128xf32>,
    return
  }
  func.func @transform_0(%arg0: i32) -> (i32, i32, i32) {
    %c0_i32 = arith.constant 0 : i32
    %c0_i32_0 = arith.constant 0 : i32
    %c0_i32_1 = arith.constant 0 : i32
    return %arg0, %c0_i32, %c0_i32_0 : i32, i32, i32
  }
  func.func @transform_1(%arg0: i32) -> (i32, i32, i32) {
    %c0_i32 = arith.constant 0 : i32
    %c0_i32_0 = arith.constant 0 : i32
    %c0_i32_1 = arith.constant 0 : i32
    return %arg0, %c0_i32, %c0_i32_0 : i32, i32, i32
  }
  func.func @transform_2(%arg0: i32) -> (i32, i32) {
    %c0_i32 = arith.constant 0 : i32
    %c0_i32_0 = arith.constant 0 : i32
    return %arg0, %c0_i32 : i32, i32
  }
}

</mosaic_0001>

<bundles_post_ra>
// kernel: tpu_custom_call.1
= control target key start
LH: loop header
LB: loop body
LE: loop exit
PB: predicated region body
PF: predicated region fallthrough
CT: control target
= control target key end

     0   :  { %vm92_vm0 = vcmask 261120   ;;  %s696_s0 = inlined_call_operand.vmem [shape: bf16[1,128,32], index: 0, kind: input, shape index: {}]   ;;  %s697_s1 = inlined_call_operand.vmem [shape: bf16[1,128,32], index: 1, kind: input, shape index: {}]   ;;  %s698_s2 = inlined_call_operand.hbm [shape: f32[1,128], index: 2, kind: output, shape index: {}]  }
   0x1   :  { %v397_v0 = vld [vmem:[%s696_s0] sm:$0xff]   ;;  %v460_v2 = vld [vmem:[%s696_s0 + $0x8] sm:$0xff]   ;;  %v461_v8 = vld [vmem:[%s696_s0 + $0x10] sm:$0xff]  }
   0x2   :  { %v429_v1 = vld [vmem:[%s697_s1] sm:$0xff]   ;;  %v398_v3 = vunpack.c.l.bf16 %v397_v0  ;;  %v402_v5 = vunpack.c.l.bf16 %v460_v2  ;;  %v467_v6 = vld [vmem:[%s697_s1 + $0x8] sm:$0xff]   ;;  %v399_v7 = vunpack.c.h.bf16 %v397_v0  ;;  %v468_v9 = vld [vmem:[%s697_s1 + $0x10] sm:$0xff]   ;;  %v403_v12 = vunpack.c.h.bf16 %v460_v2 }
   0x3   :  { %v430_v4 = vunpack.c.l.bf16 %v429_v1  ;;  %v434_v10 = vunpack.c.l.bf16 %v467_v6  ;;  %v431_v11 = vunpack.c.h.bf16 %v429_v1  ;;  %v435_v13 = vunpack.c.h.bf16 %v467_v6  ;;  %v462_v22 = vld [vmem:[%s696_s0 + $0x18] sm:$0xff]  }
   0x4   :  { %v406_v15 = vunpack.c.l.bf16 %v461_v8  ;;  %v438_v16 = vunpack.c.l.bf16 %v468_v9  ;;  %v407_v17 = vunpack.c.h.bf16 %v461_v8  ;;  %v439_v21 = vunpack.c.h.bf16 %v468_v9  ;;  %v469_v23 = vld [vmem:[%s697_s1 + $0x18] sm:$0xff]  }
   0x5   :  { %v76_v14 = vmul.f32 %v430_v4, %v398_v3  ;;  %v78_v18 = vmul.f32 %v434_v10, %v402_v5  ;;  %v77_v19 = vmul.f32 %v431_v11, %v399_v7  ;;  %v79_v20 = vmul.f32 %v435_v13, %v403_v12 }
   0x7   :  { %v93_v24 = vsel %vm92_vm0, %v76_v14, 0.0 }
   0x8   :  { %7 = vsyncpa [#allocation3], 0  ;;  %94 = vadd.xlane.f32.xlu0 %v93_v24  ;;  %v99_v25 = vsel %vm92_vm0, %v78_v18, 0.0  ;;  %v96_v26 = vsel %vm92_vm0, %v77_v19, 0.0  ;;  %v80_v27 = vmul.f32 %v438_v16, %v406_v15  ;;  %v410_v28 = vunpack.c.l.bf16 %v462_v22  ;;  %v463_v34 = vld [vmem:[%s696_s0 + $0x20] sm:$0xff]   ;;  %v464_v44 = vld [vmem:[%s696_s0 + $0x28] sm:$0xff]  }
   0x9   :  { %100 = vadd.xlane.f32.xlu1 %v99_v25  ;;  %v442_v29 = vunpack.c.l.bf16 %v469_v23  ;;  %v102_v30 = vsel %vm92_vm0, %v79_v20, 0.0  ;;  %v81_v31 = vmul.f32 %v439_v21, %v407_v17  ;;  %v411_v32 = vunpack.c.h.bf16 %v462_v22  ;;  %v470_v35 = vld [vmem:[%s697_s1 + $0x20] sm:$0xff]   ;;  %v471_v45 = vld [vmem:[%s697_s1 + $0x28] sm:$0xff]   ;;  %v465_v54 = vld [vmem:[%s696_s0 + $0x30] sm:$0xff]  }
   0xa   :  { %v443_v33 = vunpack.c.h.bf16 %v469_v23  ;;  %v105_v36 = vsel %vm92_vm0, %v80_v27, 0.0  ;;  %v414_v38 = vunpack.c.l.bf16 %v463_v34  ;;  %v446_v39 = vunpack.c.l.bf16 %v470_v35  ;;  %v472_v55 = vld [vmem:[%s697_s1 + $0x30] sm:$0xff]   ;;  %v466_v0 = vld [vmem:[%s696_s0 + $0x38] sm:$0xff]   ;;  %s563_s0 = smov [#allocation2]  }
   0xb   :  { %v82_v37 = vmul.f32 %v442_v29, %v410_v28  ;;  %v108_v40 = vsel %vm92_vm0, %v81_v31, 0.0  ;;  %v415_v42 = vunpack.c.h.bf16 %v463_v34  ;;  %v447_v43 = vunpack.c.h.bf16 %v470_v35  ;;  %v473_v1 = vld [vmem:[%s697_s1 + $0x38] sm:$0xff]   ;;  %s372_s1 = sshll.u32 %s563_s0, 4  ;;  %s373_s1 = int_to_ptr.vmem [resolvable:$true] %s372_s1 }
   0xc   :  { %97 = vadd.xlane.f32.xlu0 %v96_v26  ;;  %v83_v41 = vmul.f32 %v443_v33, %v411_v32  ;;  %v84_v47 = vmul.f32 %v446_v39, %v414_v38  ;;  %v418_v48 = vunpack.c.l.bf16 %v464_v44  ;;  %v450_v49 = vunpack.c.l.bf16 %v471_v45  ;;  %s539_s13 = scalar_lea.vmem %s373_s1, 16  ;;  %s543_s14 = scalar_lea.vmem %s373_s1, 32 }
   0xd   :  { %103 = vadd.xlane.f32.xlu1 %v102_v30  ;;  %v111_v46 = vsel %vm92_vm0, %v82_v37, 0.0  ;;  %v85_v51 = vmul.f32 %v447_v43, %v415_v42  ;;  %v419_v52 = vunpack.c.h.bf16 %v464_v44  ;;  %v451_v53 = vunpack.c.h.bf16 %v471_v45  ;;  %p540_p0 = scmp.ne.s32.totalorder %s373_s1, %s539_s13  ;;  %p544_p1 = scmp.lt.s32.totalorder %s373_s1, %s373_s1 }
   0xe   :  { %v114_v50 = vsel %vm92_vm0, %v83_v41, 0.0  ;;  %v117_v56 = vsel %vm92_vm0, %v84_v47, 0.0  ;;  %v86_v57 = vmul.f32 %v450_v49, %v418_v48  ;;  %v422_v58 = vunpack.c.l.bf16 %v465_v54  ;;  %p545_p2 = scmp.lt.s32.totalorder %s543_s14, %s539_s13 }
   0xf   :  { %v454_v59 = vunpack.c.l.bf16 %v472_v55  ;;  %v120_v60 = vsel %vm92_vm0, %v85_v51, 0.0  ;;  %v87_v61 = vmul.f32 %v451_v53, %v419_v52  ;;  %v423_v62 = vunpack.c.h.bf16 %v465_v54 }
  0x10   :  { %106 = vadd.xlane.f32.xlu0 %v105_v36  ;;  %v455_v63 = vunpack.c.h.bf16 %v472_v55  ;;  %v123_v2 = vsel %vm92_vm0, %v86_v57, 0.0  ;;  %v426_v4 = vunpack.c.l.bf16 %v466_v0  ;;  %v458_v5 = vunpack.c.l.bf16 %v473_v1  ;;  %p546_p3 = por %p545_p2, %p544_p1 }
  0x11   :  { %109 = vadd.xlane.f32.xlu1 %v108_v40  ;;  %v88_v3 = vmul.f32 %v454_v59, %v422_v58  ;;  %v126_v6 = vsel %vm92_vm0, %v87_v61, 0.0  ;;  %v427_v8 = vunpack.c.h.bf16 %v466_v0  ;;  %v459_v9 = vunpack.c.h.bf16 %v473_v1 }
  0x12   :  { %v89_v7 = vmul.f32 %v455_v63, %v423_v62  ;;  %v90_v11 = vmul.f32 %v458_v5, %v426_v4  ;;  %v253_v35 = vlaneseq  ;;  %vm264_vm1 = vcmask 130112   ;;  %p547_p4 = pnand %p546_p3, %p540_p0 }
  0x13   :  { %v129_v10 = vsel %vm92_vm0, %v88_v3, 0.0  ;;  %v91_v13 = vmul.f32 %v459_v9, %v427_v8  ;;  %vm271_vm2 = vcmask 195712   ;;  %vm278_vm3 = vcmask 261312  }
  0x14   :  { %112 = vadd.xlane.f32.xlu0 %v111_v46  ;;  %v132_v12 = vsel %vm92_vm0, %v89_v7, 0.0  ;;  %v135_v14 = vsel %vm92_vm0, %v90_v11, 0.0  ;;  %v643_v44 = vand.u32 127, %v253_v35  ;;  %v645_v51 = vshrl.u32 %v253_v35, 7 }
  0x15   :  { %115 = vadd.xlane.f32.xlu1 %v114_v50  ;;  %v138_v15 = vsel %vm92_vm0, %v91_v13, 0.0  ;;  %vm285_vm4 = vcmask 326912   ;;  %vm292_vm5 = vcmask 392512   ;;  %vm299_vm6 = vcmask 458112  }
  0x16   :  { %v266_v54 = vadd.s32 4294967280, %v643_v44  ;;  %v259_v55 = vadd.s32 4294967288, %v643_v44  ;;  %v273_v57 = vadd.s32 4294967272, %v643_v44  ;;  %v280_v63 = vadd.s32 4294967264, %v643_v44 }
  0x17   :  { %v257_v3 = vsub.s32 %v643_v44, %v645_v51  ;;  %v287_v8 = vadd.s32 4294967256, %v643_v44  ;;  %vm306_vm7 = vcmask 523712   ;;  %vm313_vm8 = vcmask 589312  }
  0x18   :  { %118 = vadd.xlane.f32.xlu0 %v117_v56  ;;  %v269_v4 = vsub.s32 %v266_v54, %v645_v51  ;;  %v262_v5 = vsub.s32 %v259_v55, %v645_v51  ;;  %v276_v7 = vsub.s32 %v273_v57, %v645_v51  ;;  %v329_v55 = vadd.s32 4294967208, %v643_v44 }
  0x19   :  { %121 = vadd.xlane.f32.xlu1 %v120_v60  ;;  %vm320_vm9 = vcmask 654912   ;;  %vm327_vm10 = vcmask 720512   ;;  %vm334_vm11 = vcmask 786112   ;;  %vm341_vm12 = vcmask 851712  }
  0x1a   :  { %vm348_vm13 = vcmask 917312   ;;  %vm355_vm14 = vcmask 982912   ;;  %vm362_vm15 = vcmask 1048512  }
  0x1c   :  { %124 = vadd.xlane.f32.xlu0 %v123_v2 }
  0x1d   :  { %127 = vadd.xlane.f32.xlu1 %v126_v6 }
  0x20   :  { %130 = vadd.xlane.f32.xlu0 %v129_v10 }
  0x21   :  { %133 = vadd.xlane.f32.xlu1 %v132_v12 }
  0x24   :  { %136 = vadd.xlane.f32.xlu0 %v135_v14 }
  0x25   :  { %139 = vadd.xlane.f32.xlu1 %v138_v15  ;;  %v283_v15 = vsub.s32 %v280_v63, %v645_v51 }
  0x95   :  { %v95_v16 = vpop.xlane.xlu0 %94 }
  0x96   :  { %v380_v17 = vmul.f32 -1.442695, %v95_v16  ;;  %v101_v18 = vpop.xlane.xlu1 %100 }
  0x97   :  { %v382_v19 = vmul.f32 -1.442695, %v101_v18 }
  0x98   :  { %475 = vpow2.f32 %v380_v17 }
  0x99   :  { %477 = vpow2.f32 %v382_v19  ;;  %v98_v20 = vpop.xlane.xlu0 %97 }
  0x9a   :  { %v381_v21 = vmul.f32 -1.442695, %v98_v20  ;;  %v104_v22 = vpop.xlane.xlu1 %103 }
  0x9b   :  { %v383_v23 = vmul.f32 -1.442695, %v104_v22 }
  0x9c   :  { %479 = vpow2.f32 %v381_v21  ;;  %v294_v21 = vadd.s32 4294967248, %v643_v44 }
  0x9d   :  { %481 = vpow2.f32 %v383_v23  ;;  %v107_v24 = vpop.xlane.xlu0 %106 }
  0x9e   :  { %v384_v25 = vmul.f32 -1.442695, %v107_v24  ;;  %v110_v26 = vpop.xlane.xlu1 %109 }
  0x9f   :  { %v385_v27 = vmul.f32 -1.442695, %v110_v26 }
  0xa0   :  { %483 = vpow2.f32 %v384_v25  ;;  %v290_v25 = vsub.s32 %v287_v8, %v645_v51 }
  0xa1   :  { %485 = vpow2.f32 %v385_v27  ;;  %v113_v28 = vpop.xlane.xlu0 %112 }
  0xa2   :  { %v476_v29 = vpop.eup %475  ;;  %v386_v30 = vmul.f32 -1.442695, %v113_v28  ;;  %v116_v31 = vpop.xlane.xlu1 %115  ;;  %v301_v28 = vadd.s32 4294967240, %v643_v44 }
  0xa3   :  { %v478_v32 = vpop.eup %477  ;;  %v189_v33 = vadd.f32 1.0, %v476_v29  ;;  %v387_v34 = vmul.f32 -1.442695, %v116_v31 }
  0xa4   :  { %v191_v36 = vadd.f32 1.0, %v478_v32  ;;  %487 = vpow2.f32 %v386_v30  ;;  %v308_v32 = vadd.s32 4294967232, %v643_v44 }
  0xa5   :  { %489 = vrcp.f32 %v189_v33  ;;  %v119_v37 = vpop.xlane.xlu0 %118 }
  0xa6   :  { %v480_v38 = vpop.eup %479  ;;  %491 = vrcp.f32 %v191_v36  ;;  %v388_v39 = vmul.f32 -1.442695, %v119_v37  ;;  %v122_v40 = vpop.xlane.xlu1 %121  ;;  %v297_v36 = vsub.s32 %v294_v21, %v645_v51 }
  0xa7   :  { %v482_v41 = vpop.eup %481  ;;  %v190_v42 = vadd.f32 1.0, %v480_v38  ;;  %493 = vpow2.f32 %v387_v34  ;;  %v389_v43 = vmul.f32 -1.442695, %v122_v40  ;;  %v304_v40 = vsub.s32 %v301_v28, %v645_v51 }
  0xa8   :  { %v192_v45 = vadd.f32 1.0, %v482_v41  ;;  %495 = vpow2.f32 %v388_v39 }
  0xa9   :  { %497 = vrcp.f32 %v190_v42  ;;  %v125_v46 = vpop.xlane.xlu0 %124 }
  0xaa   :  { %v484_v47 = vpop.eup %483  ;;  %499 = vrcp.f32 %v192_v45  ;;  %v390_v48 = vmul.f32 -1.442695, %v125_v46  ;;  %v128_v49 = vpop.xlane.xlu1 %127  ;;  %v311_v45 = vsub.s32 %v308_v32, %v645_v51  ;;  %v315_v46 = vadd.s32 4294967224, %v643_v44 }
  0xab   :  { %v486_v50 = vpop.eup %485  ;;  %v193_v52 = vadd.f32 1.0, %v484_v47  ;;  %501 = vpow2.f32 %v389_v43  ;;  %v391_v53 = vmul.f32 -1.442695, %v128_v49 }
  0xac   :  { %v194_v56 = vadd.f32 1.0, %v486_v50  ;;  %503 = vpow2.f32 %v390_v48 }
  0xad   :  { %505 = vrcp.f32 %v193_v52  ;;  %v131_v58 = vpop.xlane.xlu0 %130  ;;  %v322_v52 = vadd.s32 4294967216, %v643_v44 }
  0xae   :  { %v488_v59 = vpop.eup %487  ;;  %507 = vrcp.f32 %v194_v56  ;;  %v392_v60 = vmul.f32 -1.442695, %v131_v58  ;;  %v134_v61 = vpop.xlane.xlu1 %133 }
  0xaf   :  { %v490_v62 = vpop.eup %489  ;;  %v195_v0 = vadd.f32 1.0, %v488_v59  ;;  %509 = vpow2.f32 %v391_v53  ;;  %v393_v1 = vmul.f32 -1.442695, %v134_v61  ;;  %v318_v59 = vsub.s32 %v315_v46, %v645_v51 }
  0xb0   :  { %v492_v2 = vpop.eup %491  ;;  %511 = vpow2.f32 %v392_v60  ;;  %v258_v19 = vrot.slane %v490_v62, %v257_v3  ;;  %v325_v63 = vsub.s32 %v322_v52, %v645_v51 }
  0xb1   :  { %v494_v6 = vpop.eup %493  ;;  %513 = vrcp.f32 %v195_v0  ;;  %v137_v9 = vpop.xlane.xlu0 %136  ;;  %v270_v23 = vrot.slane %v492_v2, %v269_v4  ;;  %v336_v0 = vadd.s32 4294967200, %v643_v44  ;;  %v332_v4 = vsub.s32 %v329_v55, %v645_v51 }
  0xb2   :  { %v496_v10 = vpop.eup %495  ;;  %v196_v11 = vadd.f32 1.0, %v494_v6  ;;  %515 = vpow2.f32 %v393_v1  ;;  %v394_v12 = vmul.f32 -1.442695, %v137_v9  ;;  %v140_v13 = vpop.xlane.xlu1 %139  ;;  %v343_v9 = vadd.s32 4294967192, %v643_v44 }
  0xb3   :  { %v498_v14 = vpop.eup %497  ;;  %v197_v16 = vadd.f32 1.0, %v496_v10  ;;  %v395_v17 = vmul.f32 -1.442695, %v140_v13 }
  0xb4   :  { %v500_v18 = vpop.eup %499  ;;  %v263_v20 = vrot.slane %v498_v14, %v262_v5  ;;  %517 = vrcp.f32 %v196_v11  ;;  %v350_v14 = vadd.s32 4294967184, %v643_v44 }
  0xb5   :  { %v502_v22 = vpop.eup %501  ;;  %v277_v24 = vrot.slane %v500_v18, %v276_v7  ;;  %519 = vrcp.f32 %v197_v16  ;;  %v346_v18 = vsub.s32 %v343_v9, %v645_v51 }
  0xb6   :  { %v504_v26 = vpop.eup %503  ;;  %v265_v27 = vsel %vm264_vm1, %v263_v20, %v258_v19  ;;  %v198_v29 = vadd.f32 1.0, %v502_v22  ;;  %521 = vpow2.f32 %v394_v12  ;;  %v339_v12 = vsub.s32 %v336_v0, %v645_v51 }
  0xb7   :  { %v506_v30 = vpop.eup %505  ;;  %v272_v31 = vsel %vm271_vm2, %v270_v23, %v265_v27  ;;  %v199_v33 = vadd.f32 1.0, %v504_v26  ;;  %523 = vpow2.f32 %v395_v17  ;;  %v357_v19 = vadd.s32 4294967176, %v643_v44 }
  0xb8   :  { %v508_v34 = vpop.eup %507  ;;  %v284_v35 = vrot.slane %v506_v30, %v283_v15  ;;  %525 = vrcp.f32 %v198_v29  ;;  %v279_v38 = vsel %vm278_vm3, %v277_v24, %v272_v31  ;;  %v353_v23 = vsub.s32 %v350_v14, %v645_v51 }
  0xb9   :  { %v510_v37 = vpop.eup %509  ;;  %527 = vrcp.f32 %v199_v33  ;;  %v291_v43 = vrot.slane %v508_v34, %v290_v25  ;;  %v360_v26 = vsub.s32 %v357_v19, %v645_v51 }
  0xba   :  { %v512_v39 = vpop.eup %511  ;;  %v200_v41 = vadd.f32 1.0, %v510_v37  ;;  %v286_v49 = vsel %vm285_vm4, %v284_v35, %v279_v38 }
  0xbb   :  { %v514_v42 = vpop.eup %513  ;;  %v201_v47 = vadd.f32 1.0, %v512_v39  ;;  %v293_v57 = vsel %vm292_vm5, %v291_v43, %v286_v49 }
  0xbc   :  { %v516_v48 = vpop.eup %515  ;;  %v298_v50 = vrot.slane %v514_v42, %v297_v36  ;;  %529 = vrcp.f32 %v200_v41 }
  0xbd   :  { %531 = vrcp.f32 %v201_v47  ;;  %v202_v53 = vadd.f32 1.0, %v516_v48 }
  0xbe   :  { %v518_v54 = vpop.eup %517  ;;  %v300_v61 = vsel %vm299_vm6, %v298_v50, %v293_v57 }
  0xbf   :  { %v520_v56 = vpop.eup %519  ;;  %v305_v58 = vrot.slane %v518_v54, %v304_v40  ;;  %533 = vrcp.f32 %v202_v53 }
  0xc0   :  { %v522_v60 = vpop.eup %521  ;;  %v312_v62 = vrot.slane %v520_v56, %v311_v45 }
  0xc1   :  { %v524_v1 = vpop.eup %523  ;;  %v203_v2 = vadd.f32 1.0, %v522_v60  ;;  %v307_v7 = vsel %vm306_vm7, %v305_v58, %v300_v61 }
  0xc2   :  { %v526_v3 = vpop.eup %525  ;;  %v204_v5 = vadd.f32 1.0, %v524_v1  ;;  %v314_v11 = vsel %vm313_vm8, %v312_v62, %v307_v7 }
  0xc3   :  { %v528_v6 = vpop.eup %527  ;;  %v319_v8 = vrot.slane %v526_v3, %v318_v59  ;;  %535 = vrcp.f32 %v203_v2 }
  0xc4   :  { %v326_v10 = vrot.slane %v528_v6, %v325_v63  ;;  %537 = vrcp.f32 %v204_v5 }
  0xc5   :  { %v321_v17 = vsel %vm320_vm9, %v319_v8, %v314_v11 }
  0xc6   :  { %v530_v13 = vpop.eup %529  ;;  %v328_v20 = vsel %vm327_vm10, %v326_v10, %v321_v17 }
  0xc7   :  { %v532_v15 = vpop.eup %531  ;;  %v333_v16 = vrot.slane %v530_v13, %v332_v4 }
  0xc8   :  { %v340_v21 = vrot.slane %v532_v15, %v339_v12 }
  0xc9   :  { %v534_v22 = vpop.eup %533  ;;  %v335_v24 = vsel %vm334_vm11, %v333_v16, %v328_v20 }
  0xca   :  { %v347_v25 = vrot.slane %v534_v22, %v346_v18  ;;  %v342_v27 = vsel %vm341_vm12, %v340_v21, %v335_v24 }
  0xcc   :  { %v349_v44 = vsel %vm348_vm13, %v347_v25, %v342_v27 }
  0xcd   :  { %v536_v28 = vpop.eup %535 }
  0xce   :  { %v538_v29 = vpop.eup %537  ;;  %v354_v30 = vrot.slane %v536_v28, %v353_v23 }
  0xcf   :  { %v361_v31 = vrot.slane %v538_v29, %v360_v26 }
  0xd0   :  { %v356_v32 = vsel %vm355_vm14, %v354_v30, %v349_v44 }
  0xd1   :  { %v363_v33 = vsel %vm362_vm15, %v361_v31, %v356_v32 }
  0xd2   :  { %365 = vst [vmem:[#allocation2] sm:$0x1] %v363_v33 }
  0xd3   :  { %550 = shalt.err (!%p547_p4)
}
  0xd4   :  { %s551_s17 = scalar_lea.hbm %s698_s2, 16 }
  0xd5   :  { %p552_p5 = scmp.ne.s32.totalorder %s698_s2, %s551_s17  ;;  %p555_p6 = scmp.lt.u32.totalorder %s551_s17, %s698_s2 }
  0xd7   :  { %p557_p7 = pnand %p555_p6, %p552_p5 }
  0xd9   :  { %560 = shalt.err (!%p557_p7)
}
  0xda   :  { %375 = dma.vmem_to_hbm [thread:$0]  %s373_s1, 16, %s698_s2, [#allocation3]  }
  0xdb   :  { %561 = dma.done.wait [#allocation3], 16  }
  0xdc   :  { %562 = vsyncadd [#allocation3], 4294967280 }
  0xdd   :  { %379 = vsyncpa [#allocation3], 1 }

</bundles_post_ra>
